<compile_context>
chip_gen: v5e
topology: v5e:2x2
jax: 0.10.0
libtpu: 0.0.40
codegen_flags: <defaults>
</compile_context>

<pallas_src>
import functools

import jax
import jax.numpy as jnp
from jax.experimental import pallas as pl
from jax.experimental.pallas import tpu as pltpu


def _avgmax_pool_kernel(x_ref, o_ref, sum_acc, max_acc, *,
                        s_true, tail_start, s_ragged, neg_sentinel):
    # x_ref:       (row_tile, s_tile) block of the (R, S) input, native dtype
    # o_ref:       (row_tile, 1) output block, resident across the S grid axis
    # sum/max_acc: (row_tile, 1) f32 VMEM accumulators
    s = pl.program_id(1)
    last_s = pl.num_programs(1) - 1

    @pl.when(s == 0)
    def _init():
        sum_acc[...] = jnp.zeros_like(sum_acc)
        max_acc[...] = jnp.full_like(max_acc, -jnp.inf)

    x = x_ref[...]  # keep native dtype in VMEM; accumulate in f32

    if s_ragged:
        # Hot path: every S step except the ragged last one is unmasked.
        @pl.when(s < last_s)
        def _full_tile():
            sum_acc[...] += jnp.sum(x, axis=-1, keepdims=True, dtype=jnp.float32)
            max_acc[...] = jnp.maximum(
                max_acc[...],
                jnp.max(x, axis=-1, keepdims=True).astype(jnp.float32))

        # Tail tile: lanes beyond S are unspecified (no wrapper pad), so mask
        # BOTH the sum and the max. Only compiled onto the last S step.
        @pl.when(s == last_s)
        def _tail_tile():
            col = tail_start + jax.lax.broadcasted_iota(jnp.int32, x.shape, 1)
            valid = col < s_true
            xz = jnp.where(valid, x, jnp.zeros_like(x))
            sum_acc[...] += jnp.sum(xz, axis=-1, keepdims=True, dtype=jnp.float32)
            xm = jnp.where(valid, x, jnp.asarray(neg_sentinel, dtype=x.dtype))
            max_acc[...] = jnp.maximum(
                max_acc[...],
                jnp.max(xm, axis=-1, keepdims=True).astype(jnp.float32))
    else:
        sum_acc[...] += jnp.sum(x, axis=-1, keepdims=True, dtype=jnp.float32)
        max_acc[...] = jnp.maximum(
            max_acc[...],
            jnp.max(x, axis=-1, keepdims=True).astype(jnp.float32))

    @pl.when(s == last_s)
    def _finalize():
        # 0.5 * mean + 0.5 * max, with (0.5 / S) folded into a single scale.
        out = sum_acc[...] * (0.5 / s_true) + 0.5 * max_acc[...]
        o_ref[...] = out.astype(o_ref.dtype)


def fast_adaptive_avg_max_pool(x, *, flatten=False):
    """x: (N, C, H, W, D) NCHWD. Returns 0.5*mean + 0.5*amax over spatial dims,
    shaped (N, C, 1, 1, 1) if flatten=False (PyTorch keepdim=True), else (N, C)."""
    N, C, H, W, D = x.shape
    S = H * W * D
    R = N * C
    x2 = x.reshape(R, S)                       # contiguous -> free reshape
    itemsize = x.dtype.itemsize

    # ---- VMEM-budget-aware tile selection (no wrapper padding) ----
    S_TILE_MAX = 4096
    if S < 128:
        s_tile = S                              # full lane extent
    else:
        s_tile = min(pl.cdiv(S, 128) * 128, S_TILE_MAX)

    # Row tile: multiple of 8 (or full extent). Capped at 256 so large N*C
    # gives the "parallel" axis many blocks (feeds both v7x TensorCores) and
    # the double-buffered input block stays well under scoped VMEM everywhere.
    budget = 16 * 1024 * 1024                   # target for 2x input block
    max_rows = max(8, budget // (2 * s_tile * itemsize))
    row_tile = max(8, min(256, (max_rows // 8) * 8))
    if R <= row_tile:
        row_tile = R                            # full extent (ok even if not %8)

    num_r_blocks = pl.cdiv(R, row_tile)
    num_s_blocks = pl.cdiv(S, s_tile)
    s_ragged = (S % s_tile) != 0

    if jnp.issubdtype(x.dtype, jnp.floating):
        neg_sentinel = float(jnp.finfo(x.dtype).min)   # safe for fp8 (no inf)
    else:
        neg_sentinel = int(jnp.iinfo(x.dtype).min)

    kernel = functools.partial(
        _avgmax_pool_kernel,
        s_true=S,
        tail_start=(num_s_blocks - 1) * s_tile,
        s_ragged=s_ragged,
        neg_sentinel=neg_sentinel)

    in_block_bytes = row_tile * s_tile * itemsize
    # 2x for double buffering, 2x headroom; at least 16 MiB, at most 64 MiB.
    vmem_limit = int(min(64 * 2**20, max(4 * in_block_bytes, 16 * 2**20)))

    out = pl.pallas_call(
        kernel,
        out_shape=jax.ShapeDtypeStruct((R, 1), x.dtype),
        grid=(num_r_blocks, num_s_blocks),
        in_specs=[pl.BlockSpec((row_tile, s_tile), lambda r, s: (r, s))],
        out_specs=pl.BlockSpec((row_tile, 1), lambda r, s: (r, 0)),
        scratch_shapes=[
            pltpu.VMEM((row_tile, 1), jnp.float32),   # partial sums
            pltpu.VMEM((row_tile, 1), jnp.float32),   # running max
        ],
        compiler_params=pltpu.CompilerParams(
            dimension_semantics=("parallel", "arbitrary"),
            vmem_limit_bytes=vmem_limit),
        cost_estimate=pl.CostEstimate(
            flops=2 * R * S,
            transcendentals=0,
            bytes_accessed=R * S * itemsize + R * itemsize),
    )(x2)

    if flatten:
        return out.reshape(N, C)                # (N, C)
    return out.reshape(N, C, 1, 1, 1)           # keepdim=True over spatial dims


if __name__ == "__main__":
    key = jax.random.PRNGKey(0)
    k1, k2 = jax.random.split(key)

    # Case 1: S = 8*8*8 = 512 (lane-dense, no ragged tail).
    N, C, H, W, D = 2, 4, 8, 8, 8
    x = jax.random.normal(k1, (N, C, H, W, D), dtype=jnp.float32)
    out = fast_adaptive_avg_max_pool(x)
    jax.block_until_ready(out)
    ref = (0.5 * jnp.mean(x, axis=(2, 3, 4), keepdims=True)
           + 0.5 * jnp.max(x, axis=(2, 3, 4), keepdims=True))
    assert out.shape == (N, C, 1, 1, 1)
    assert jnp.allclose(out, ref, atol=1e-5, rtol=1e-5)

    # Case 2: ragged spatial size (S = 5*6*7 = 210 -> in-kernel tail mask).
    x2 = jax.random.normal(k2, (2, 4, 5, 6, 7), dtype=jnp.float32)
    out2 = fast_adaptive_avg_max_pool(x2, flatten=True)
    jax.block_until_ready(out2)
    ref2 = (0.5 * jnp.mean(x2, axis=(2, 3, 4))
            + 0.5 * jnp.max(x2, axis=(2, 3, 4)))
    assert out2.shape == (2, 4)
    assert jnp.allclose(out2, ref2, atol=1e-5, rtol=1e-5)

    print("KERNEL_OK")
</pallas_src>

<mosaic_0001>
module attributes {stable_mosaic.version = 11 : i64} {
  func.func @_avgmax_pool_kernel(%arg0: i32, %arg1: i32, %arg2: memref<8x512xf32, #tpu.memory_space<vmem>>, %arg3: memref<8x1xf32, #tpu.memory_space<vmem>>, %arg4: memref<8x1xf32, #tpu.memory_space<vmem>>, %arg5: memref<8x1xf32, #tpu.memory_space<vmem>>) attributes {dimension_semantics = [#tpu.dimension_semantics<parallel>, #tpu.dimension_semantics<arbitrary>], iteration_bounds = array<i64: 1, 1>, scalar_prefetch = 0 : i64, scratch_operands = 2 : i64, tpu.core_type = #tpu.core_type<tc>, window_params = [{transform_indices = @transform_0, window_bounds = array<i64: 8, 512>}, {transform_indices = @transform_1, window_bounds = array<i64: 8, 1>}]} {
    %c0_i32 = arith.constant 0 : i32
    %0 = arith.cmpi eq, %arg1, %c0_i32 : i32
    %1 = arith.extui %0 : i1 to i32
    %c0_i32_0 = arith.constant 0 : i32
    %2 = arith.cmpi ne, %1, %c0_i32_0 : i32
    scf.if %2 {
      %cst_13 = arith.constant 0.000000e+00 : f32
      %17 = vector.broadcast %cst_13 : f32 to vector<8x1xf32>
      %c0_14 = arith.constant 0 : index
      %c0_15 = arith.constant 0 : index
      %18 = vector.load %arg4[%c0_14, %c0_15] : memref<8x1xf32, #tpu.memory_space<vmem>>, vector<8x1xf32>
      tpu.vector_store %arg4[%c0_14, %c0_15], %17 {strides = array<i32>} : memref<8x1xf32, #tpu.memory_space<vmem>>, vector<8x1xf32>,
      %cst_16 = arith.constant 0xFF800000 : f32
      %19 = vector.broadcast %cst_16 : f32 to vector<8x1xf32>
      %c0_17 = arith.constant 0 : index
      %c0_18 = arith.constant 0 : index
      %20 = vector.load %arg5[%c0_17, %c0_18] : memref<8x1xf32, #tpu.memory_space<vmem>>, vector<8x1xf32>
      tpu.vector_store %arg5[%c0_17, %c0_18], %19 {strides = array<i32>} : memref<8x1xf32, #tpu.memory_space<vmem>>, vector<8x1xf32>,
    } else {
    }
    %c0 = arith.constant 0 : index
    %c0_1 = arith.constant 0 : index
    %3 = vector.load %arg2[%c0, %c0_1] : memref<8x512xf32, #tpu.memory_space<vmem>>, vector<8x512xf32>
    %c0_2 = arith.constant 0 : index
    %c0_3 = arith.constant 0 : index
    %4 = vector.load %arg4[%c0_2, %c0_3] : memref<8x1xf32, #tpu.memory_space<vmem>>, vector<8x1xf32>
    %cst = arith.constant dense<0.000000e+00> : vector<8xf32>
    %5 = vector.multi_reduction <add>, %3, %cst [1] : vector<8x512xf32> to vector<8xf32>
    %6 = vector.shape_cast %5 : vector<8xf32> to vector<8x1xf32>
    %7 = arith.addf %4, %6 : vector<8x1xf32>
    %c0_4 = arith.constant 0 : index
    %c0_5 = arith.constant 0 : index
    %8 = vector.load %arg4[%c0_4, %c0_5] : memref<8x1xf32, #tpu.memory_space<vmem>>, vector<8x1xf32>
    tpu.vector_store %arg4[%c0_4, %c0_5], %7 {strides = array<i32>} : memref<8x1xf32, #tpu.memory_space<vmem>>, vector<8x1xf32>,
    %c0_6 = arith.constant 0 : index
    %c0_7 = arith.constant 0 : index
    %9 = vector.load %arg5[%c0_6, %c0_7] : memref<8x1xf32, #tpu.memory_space<vmem>>, vector<8x1xf32>
    %cst_8 = arith.constant dense<0xFF800000> : vector<8xf32>
    %10 = vector.multi_reduction <maximumf>, %3, %cst_8 [1] : vector<8x512xf32> to vector<8xf32>
    %11 = vector.shape_cast %10 : vector<8xf32> to vector<8x1xf32>
    %12 = arith.maximumf %9, %11 : vector<8x1xf32>
    %c0_9 = arith.constant 0 : index
    %c0_10 = arith.constant 0 : index
    %13 = vector.load %arg5[%c0_9, %c0_10] : memref<8x1xf32, #tpu.memory_space<vmem>>, vector<8x1xf32>
    tpu.vector_store %arg5[%c0_9, %c0_10], %12 {strides = array<i32>} : memref<8x1xf32, #tpu.memory_space<vmem>>, vector<8x1xf32>,
    %c0_i32_11 = arith.constant 0 : i32
    %14 = arith.cmpi eq, %arg1, %c0_i32_11 : i32
    %15 = arith.extui %14 : i1 to i32
    %c0_i32_12 = arith.constant 0 : i32
    %16 = arith.cmpi ne, %15, %c0_i32_12 : i32
    scf.if %16 {
      %c0_13 = arith.constant 0 : index
      %c0_14 = arith.constant 0 : index
      %17 = vector.load %arg4[%c0_13, %c0_14] : memref<8x1xf32, #tpu.memory_space<vmem>>, vector<8x1xf32>
      %cst_15 = arith.constant 9.765625E-4 : f32
      %18 = vector.broadcast %cst_15 : f32 to vector<8x1xf32>
      %19 = arith.mulf %17, %18 : vector<8x1xf32>
      %c0_16 = arith.constant 0 : index
      %c0_17 = arith.constant 0 : index
      %20 = vector.load %arg5[%c0_16, %c0_17] : memref<8x1xf32, #tpu.memory_space<vmem>>, vector<8x1xf32>
      %cst_18 = arith.constant 5.000000e-01 : f32
      %21 = vector.broadcast %cst_18 : f32 to vector<8x1xf32>
      %22 = arith.mulf %21, %20 : vector<8x1xf32>
      %23 = arith.addf %19, %22 : vector<8x1xf32>
      %c0_19 = arith.constant 0 : index
      %c0_20 = arith.constant 0 : index
      %24 = vector.load %arg3[%c0_19, %c0_20] : memref<8x1xf32, #tpu.memory_space<vmem>>, vector<8x1xf32>
      tpu.vector_store %arg3[%c0_19, %c0_20], %23 {strides = array<i32>} : memref<8x1xf32, #tpu.memory_space<vmem>>, vector<8x1xf32>,
    } else {
    }
    return
  }
  func.func @transform_0(%arg0: i32, %arg1: i32) -> (i32, i32) {
    %c0_i32 = arith.constant 0 : i32
    return %arg0, %arg1 : i32, i32
  }
  func.func @transform_1(%arg0: i32, %arg1: i32) -> (i32, i32) {
    %c0_i32 = arith.constant 0 : i32
    %c0_i32_0 = arith.constant 0 : i32
    return %arg0, %c0_i32 : i32, i32
  }
}

</mosaic_0001>

<bundles_post_ra>
// kernel: tpu_custom_call.1
= control target key start
LH: loop header
LB: loop body
LE: loop exit
PB: predicated region body
PF: predicated region fallthrough
CT: control target
= control target key end

     0   :  { %6 = vsyncpa [#allocation5], 0  ;;  %s93_s9 = smov [#allocation4]   ;;  %s117_s0 = inlined_call_operand.hbm [shape: f32[8,512], index: 0, kind: input, shape index: {}]   ;;  %s118_s1 = inlined_call_operand.vmem [shape: f32[8,1], index: 1, kind: output, shape index: {}]  }
   0x1   :  { %s12_s8 = sshll.u32 %s117_s0, 4  ;;  %s14_s10 = sshll.u32 %s93_s9, 4  ;;  %s13_s8 = int_to_ptr.hbm [resolvable:$true] %s12_s8  ;;  %s15_s10 = int_to_ptr.vmem [resolvable:$true] %s14_s10 }
   0x2   :  { %17 = dma.hbm_to_vmem [thread:$0]  %s13_s8, 512, %s15_s10, [#allocation5]  }
   0x3   :  { %91 = dma.done.wait [#allocation5], 512  }
   0x4   :  { %92 = vsyncadd [#allocation5], 4294966784  ;;  %vm26_vm0 = vcmask 7168   ;;  %v94_v0 = vmov 0.0   ;;  %v29_v1 = vld [vmem:[#allocation4] sm:$0xff]  ;;  %v30_v2 = vld [vmem:[#allocation4 + $0x8] sm:$0xff] }
   0x5   :  { %27 = vst.msk [vmem:[#allocation2] sm:$0xff] %vm26_vm0, %v94_v0  ;;  %v31_v3 = vld [vmem:[#allocation4 + $0x10] sm:$0xff]  ;;  %v34_v4 = vadd.f32 %v30_v2, %v29_v1  ;;  %v32_v5 = vld [vmem:[#allocation4 + $0x18] sm:$0xff]  ;;  %v43_v9 = vmax.f32 %v29_v1, %v30_v2  ;;  %v95_v11 = vmov -inf  }
   0x6   :  { %v44_v8 = vmax.f32 %v31_v3, %v32_v5  ;;  %28 = vst.msk [vmem:[#allocation3] sm:$0xff] %vm26_vm0, %v95_v11 }
   0x7   :  { %v35_v6 = vadd.f32 %v34_v4, %v31_v3 }
   0x8   :  { %v45_v10 = vmax.f32 %v43_v9, %v44_v8 }
   0x9   :  { %v36_v7 = vadd.f32 %v35_v6, %v32_v5 }
   0xb   :  { %37 = vadd.xlane.f32.xlu0 %v36_v7 }
   0xc   :  { %v33_v12 = vld [vmem:[#allocation2] sm:$0xff] }
   0xd   :  { %v42_v15 = vld [vmem:[#allocation3] sm:$0xff] }
  0x13   :  { %46 = vmax.xlane.f32.xlu0 %v45_v10 }
  0x7e   :  { %v38_v13 = vpop.xlane.xlu0 %37 }
  0x7f   :  { %v39_v14 = vadd.f32 %v38_v13, %v33_v12 }
  0x81   :  { %41 = vst.msk [vmem:[#allocation2] sm:$0xff] %vm26_vm0, %v39_v14 }
  0x86   :  { %v47_v16 = vpop.xlane.xlu0 %46 }
  0x87   :  { %v48_v17 = vmax.f32 %v42_v15, %v47_v16 }
  0x88   :  { %v53_v18 = vld [vmem:[#allocation2] sm:$0xff] }
  0x89   :  { %49 = vst.msk [vmem:[#allocation3] sm:$0xff] %vm26_vm0, %v48_v17  ;;  %v54_v20 = vmul.f32 0.0009765625, %v53_v18 }
  0x90   :  { %v55_v19 = vld [vmem:[#allocation3] sm:$0xff] }
  0x91   :  { %v56_v21 = vmul.f32 0.5, %v55_v19 }
  0x93   :  { %v57_v22 = vadd.f32 %v56_v21, %v54_v20 }
  0x95   :  { %58 = vst.msk [vmem:[%s118_s1] sm:$0xff] %vm26_vm0, %v57_v22 }
  0x96   :  { %63 = vsyncpa [#allocation5], 1 }

</bundles_post_ra>
